<compile_context>
chip_gen: v7x
topology: tpu7x:2x2x1
jax: 0.10.0
libtpu: 0.0.40
codegen_flags: <defaults>
</compile_context>

<pallas_src>
import jax
import jax.numpy as jnp
from jax.experimental import pallas as pl
from jax.experimental.pallas import tpu as pltpu

_LANE = 128
# ~2 MiB per buffer -> 2 in + 2 out double-buffers = 8 MiB VMEM, comfortably
# inside every generation's scoped-VMEM budget (v5e 16 MiB default, v6e/v7x
# 32 MiB), and in the 1-4 MiB regime that saturates HBM bandwidth (~85% roofline).
_TARGET_TILE_BYTES = 2 * 1024 * 1024
# Below this, custom-call + pipeline prologue overhead dwarfs the HBM traffic;
# XLA's fused elementwise is strictly better.
_SMALL_INPUT_BYTES = 256 * 1024


def _divide_kernel(x_ref, o_ref):
    # Exact division (matches torch `x / 100`), runs on the VPU/EUP.
    o_ref[...] = x_ref[...] / jnp.asarray(100.0, dtype=x_ref.dtype)


def _sublane_pack(dtype) -> int:
    # Sublane packing factor: 8 for 4-byte, 16 for 2-byte, 32 for 1-byte dtypes.
    return {4: 8, 2: 16, 1: 32}.get(jnp.dtype(dtype).itemsize, 8)


def divide_by_100(x: jax.Array, *, force_pallas: bool = False) -> jax.Array:
    """Computes x / 100 with a Pallas TPU kernel (float inputs, any shape)."""
    orig_shape = x.shape
    dtype = x.dtype
    itemsize = jnp.dtype(dtype).itemsize
    n = x.size

    if n == 0:
        return x

    # Tiny-input bypass: let XLA's fused elementwise handle it.
    if (n * itemsize < _SMALL_INPUT_BYTES) and not force_pallas:
        return x / jnp.asarray(100.0, dtype=dtype)

    pack = _sublane_pack(dtype)

    # Flatten (free bitcast reshape) and pick the widest lane-dense last dim
    # that divides n: wider rows -> unmasked vld/vst and fewer DMA descriptors.
    x_flat = jnp.ravel(x)
    lane_width = None
    for cand in (1024, 512, 256, _LANE):
        if n % cand == 0:
            lane_width = cand
            break

    n_padded = n
    if lane_width is None:
        # Rare unaligned case (n % 128 != 0): minimal one-time pad of the flat
        # vector. Aligned sizes take the zero-copy path above.
        lane_width = 1024
        n_padded = ((n + lane_width - 1) // lane_width) * lane_width
        x_flat = jnp.concatenate(
            [x_flat, jnp.zeros((n_padded - n,), dtype=dtype)]
        )

    rows = n_padded // lane_width
    row_bytes = lane_width * itemsize

    # Tile rows so each buffer is ~_TARGET_TILE_BYTES, rounded to the dtype's
    # sublane pack, clamped to the (pack-rounded) number of rows.
    tile_rows = max(pack, (_TARGET_TILE_BYTES // row_bytes) // pack * pack)
    rows_rounded = ((rows + pack - 1) // pack) * pack
    tile_rows = min(tile_rows, rows_rounded)

    x2d = x_flat.reshape(rows, lane_width)
    # cdiv grid: keep the big tile; Pallas masks the partial last block.
    grid = (pl.cdiv(rows, tile_rows),)

    out2d = pl.pallas_call(
        _divide_kernel,
        out_shape=jax.ShapeDtypeStruct((rows, lane_width), dtype),
        grid_spec=pltpu.PrefetchScalarGridSpec(
            num_scalar_prefetch=0,
            grid=grid,
            in_specs=[pl.BlockSpec((tile_rows, lane_width), lambda i: (i, 0))],
            out_specs=pl.BlockSpec((tile_rows, lane_width), lambda i: (i, 0)),
        ),
        compiler_params=pltpu.CompilerParams(
            # "parallel" lets v7x shard the grid across its 2 TensorCores.
            dimension_semantics=("parallel",),
            vmem_limit_bytes=32 * 1024 * 1024,
        ),
        cost_estimate=pl.CostEstimate(
            flops=n, transcendentals=0, bytes_accessed=2 * n * itemsize
        ),
    )(x2d)

    out_flat = out2d.reshape(-1)
    if n_padded != n:
        out_flat = out_flat[:n]
    return out_flat.reshape(orig_shape)


if __name__ == "__main__":
    key = jax.random.PRNGKey(0)
    k1, k2, k3 = jax.random.split(key, 3)

    # 1) Small NCHW input consistent with the module's usage; force the Pallas
    #    path so the kernel itself is exercised despite the tiny-input bypass.
    x_small = jax.random.normal(k1, (2, 4, 16, 16), dtype=jnp.float32)
    out_small = jax.block_until_ready(divide_by_100(x_small, force_pallas=True))
    assert out_small.shape == x_small.shape and out_small.dtype == x_small.dtype
    assert jnp.allclose(out_small, x_small / 100.0, rtol=1e-6, atol=1e-8)

    # 2) Larger lane-aligned input -> big-tile, multi-step grid path (grid=2).
    x_big = jax.random.normal(k2, (8, 4, 128, 256), dtype=jnp.float32)
    out_big = jax.block_until_ready(divide_by_100(x_big))
    assert jnp.allclose(out_big, x_big / 100.0, rtol=1e-6, atol=1e-8)

    # 3) Unaligned element count -> minimal-pad fallback path.
    x_odd = jax.random.normal(k3, (3, 5, 7, 11), dtype=jnp.float32)
    out_odd = jax.block_until_ready(divide_by_100(x_odd, force_pallas=True))
    assert out_odd.shape == x_odd.shape
    assert jnp.allclose(out_odd, x_odd / 100.0, rtol=1e-6, atol=1e-8)

    print("KERNEL_OK")
</pallas_src>

<mosaic_0001>
module attributes {stable_mosaic.version = 11 : i64} {
  func.func @_divide_kernel(%arg0: i32, %arg1: memref<8x1024xf32, #tpu.memory_space<vmem>>, %arg2: memref<8x1024xf32, #tpu.memory_space<vmem>>) attributes {dimension_semantics = [#tpu.dimension_semantics<parallel>], iteration_bounds = array<i64: 1>, scalar_prefetch = 0 : i64, scratch_operands = 0 : i64, tpu.core_type = #tpu.core_type<tc>, window_params = [{transform_indices = @transform_0, window_bounds = array<i64: 8, 1024>}, {transform_indices = @transform_1, window_bounds = array<i64: 8, 1024>}]} {
    %c0 = arith.constant 0 : index
    %c0_0 = arith.constant 0 : index
    %0 = vector.load %arg1[%c0, %c0_0] : memref<8x1024xf32, #tpu.memory_space<vmem>>, vector<8x1024xf32>
    %cst = arith.constant 1.000000e+02 : f32
    %1 = vector.broadcast %cst : f32 to vector<8x1024xf32>
    %2 = arith.divf %0, %1 : vector<8x1024xf32>
    %c0_1 = arith.constant 0 : index
    %c0_2 = arith.constant 0 : index
    %3 = vector.load %arg2[%c0_1, %c0_2] : memref<8x1024xf32, #tpu.memory_space<vmem>>, vector<8x1024xf32>
    tpu.vector_store %arg2[%c0_1, %c0_2], %2 {strides = array<i32>} : memref<8x1024xf32, #tpu.memory_space<vmem>>, vector<8x1024xf32>,
    return
  }
  func.func @transform_0(%arg0: i32) -> (i32, i32) {
    %c0_i32 = arith.constant 0 : i32
    %c0_i32_0 = arith.constant 0 : i32
    return %arg0, %c0_i32 : i32, i32
  }
  func.func @transform_1(%arg0: i32) -> (i32, i32) {
    %c0_i32 = arith.constant 0 : i32
    %c0_i32_0 = arith.constant 0 : i32
    return %arg0, %c0_i32 : i32, i32
  }
}

</mosaic_0001>

<bundles_post_ra>
// kernel: tpu_custom_call.1
= control target key start
LH: loop header
LB: loop body
LE: loop exit
PB: predicated region body
PF: predicated region fallthrough
CT: control target
= control target key end

     0   :  { %6 = vsyncpa [#allocation3], 0  ;;  %s161_s0 = inlined_call_operand.hbm [shape: f32[2,1024], index: 0, kind: input, shape index: {}]   ;;  %s162_s1 = inlined_call_operand.hbm [shape: f32[2,1024], index: 1, kind: output, shape index: {}]  }
   0x1   :  { %7 = vsyncpa [#allocation4], 0 }
   0x2   :  { %12 = vsyncadd [#allocation3], 768  ;;  %s117_s6 = smov [#allocation2]   ;;  %s69_s10 = scalar_lea.hbm %s161_s0, 256 }
   0x3   :  { %s13_s7 = sshll.u32 %s117_s6, 4  ;;  %p70_p0 = scmp.ne.s32.totalorder %s161_s0, %s69_s10  ;;  %s14_s7 = int_to_ptr.vmem [resolvable:$true] %s13_s7 }
   0x4   :  { %p73_p1 = scmp.lt.u32.totalorder %s69_s10, %s161_s0 }
   0x6   :  { %p75_p2 = pnand %p73_p1, %p70_p0 }
   0x8   :  { %78 = shalt.err (!%p75_p2)
}
   0x9   :  { %s79_s15 = scalar_lea.vmem %s14_s7, 256  ;;  %s83_s16 = scalar_lea.vmem %s14_s7, 1024 }
   0xa   :  { %p80_p3 = scmp.ne.s32.totalorder %s14_s7, %s79_s15  ;;  %p84_p4 = scmp.lt.s32.totalorder %s14_s7, %s14_s7 }
   0xb   :  { %p85_p5 = scmp.lt.s32.totalorder %s83_s16, %s79_s15 }
   0xd   :  { %p86_p6 = por %p85_p5, %p84_p4 }
   0xf   :  { %p87_p7 = pnand %p86_p6, %p80_p3 }
  0x11   :  { %90 = shalt.err (!%p87_p7)
}
  0x12   :  { %s118_s17 = smov 256   ;;  %s119_s18 = smov 16  }
  0x13   :  { %19 = dma.hbm_to_vmem [thread:$0]  %s161_s0, 256, %s14_s7, [#allocation3], %s118_s17, %s118_s17, %s119_s18  }
  0x14   :  { %113 = dma.done.wait [#allocation3], 1024  }
  0x15   :  { %114 = vsyncadd [#allocation3], 4294966272  ;;  %v23_v0 = vld [vmem:[#allocation2] sm:$0xff]  ;;  %v24_v1 = vld [vmem:[#allocation2 + $0x8] sm:$0xff] }
  0x16   :  { %v25_v2 = vld [vmem:[#allocation2 + $0x10] sm:$0xff]  ;;  %v32_v3 = vmul.f32 0.01, %v23_v0  ;;  %v33_v4 = vmul.f32 0.01, %v24_v1  ;;  %v26_v6 = vld [vmem:[#allocation2 + $0x18] sm:$0xff] }
  0x17   :  { %v34_v5 = vmul.f32 0.01, %v25_v2  ;;  %v27_v7 = vld [vmem:[#allocation2 + $0x20] sm:$0xff]  ;;  %v28_v8 = vld [vmem:[#allocation2 + $0x28] sm:$0xff]  ;;  %v35_v9 = vmul.f32 0.01, %v26_v6 }
  0x18   :  { %40 = vst [vmem:[#allocation5] sm:$0xff] %v32_v3  ;;  %41 = vst [vmem:[#allocation5 + $0x8] sm:$0xff] %v33_v4  ;;  %v36_v10 = vmul.f32 0.01, %v27_v7  ;;  %v37_v11 = vmul.f32 0.01, %v28_v8 }
  0x19   :  { %42 = vst [vmem:[#allocation5 + $0x10] sm:$0xff] %v34_v5  ;;  %v29_v12 = vld [vmem:[#allocation2 + $0x30] sm:$0xff]  ;;  %v30_v13 = vld [vmem:[#allocation2 + $0x38] sm:$0xff]  ;;  %43 = vst [vmem:[#allocation5 + $0x18] sm:$0xff] %v35_v9 }
  0x1a   :  { %44 = vst [vmem:[#allocation5 + $0x20] sm:$0xff] %v36_v10  ;;  %45 = vst [vmem:[#allocation5 + $0x28] sm:$0xff] %v37_v11  ;;  %v38_v14 = vmul.f32 0.01, %v29_v12  ;;  %v39_v15 = vmul.f32 0.01, %v30_v13 }
  0x1c   :  { %46 = vst [vmem:[#allocation5 + $0x30] sm:$0xff] %v38_v14  ;;  %47 = vst [vmem:[#allocation5 + $0x38] sm:$0xff] %v39_v15 }
  0x1d   :  { %52 = vsyncadd [#allocation4], 768  ;;  %s120_s0 = smov [#allocation5]  }
  0x1e   :  { %s53_s21 = sshll.u32 %s120_s0, 4  ;;  %s54_s21 = int_to_ptr.vmem [resolvable:$true] %s53_s21 }
  0x1f   :  { %s91_s22 = scalar_lea.vmem %s54_s21, 256  ;;  %s95_s23 = scalar_lea.vmem %s54_s21, 1024 }
  0x20   :  { %p92_p8 = scmp.ne.s32.totalorder %s54_s21, %s91_s22  ;;  %p96_p9 = scmp.lt.s32.totalorder %s54_s21, %s54_s21 }
  0x21   :  { %p97_p10 = scmp.lt.s32.totalorder %s95_s23, %s91_s22 }
  0x23   :  { %p98_p11 = por %p97_p10, %p96_p9 }
  0x25   :  { %p99_p12 = pnand %p98_p11, %p92_p8 }
  0x27   :  { %102 = shalt.err (!%p99_p12)
}
  0x28   :  { %s103_s26 = scalar_lea.hbm %s162_s1, 256 }
  0x29   :  { %p104_p13 = scmp.ne.s32.totalorder %s162_s1, %s103_s26  ;;  %p107_p0 = scmp.lt.u32.totalorder %s103_s26, %s162_s1 }
  0x2b   :  { %p109_p1 = pnand %p107_p0, %p104_p13 }
  0x2d   :  { %112 = shalt.err (!%p109_p1)
}
  0x2e   :  { %59 = dma.vmem_to_hbm [thread:$0]  %s54_s21, 256, %s162_s1, [#allocation4], %s118_s17, %s118_s17, %s119_s18  }
  0x2f   :  { %115 = dma.done.wait [#allocation4], 1024  }
  0x30   :  { %116 = vsyncadd [#allocation4], 4294966272 }
  0x31   :  { %63 = vsyncpa [#allocation3], 1 }
  0x32   :  { %64 = vsyncpa [#allocation4], 1 }

</bundles_post_ra>
